<compile_context>
chip_gen: v5e
topology: v5e:2x2
jax: 0.10.0
libtpu: 0.0.40
codegen_flags: <defaults>
</compile_context>

<pallas_src>
import functools

import jax
import jax.numpy as jnp
from jax.experimental import pallas as pl
from jax.experimental.pallas import tpu as pltpu


def _round_up(x, m):
    return ((x + m - 1) // m) * m


def _bar_loss_kernel(left_ref, logw_ref, logits_ref, y_ref, loss_ref, *,
                     smoothing):
    left = left_ref[...].astype(jnp.float32)       # (1, K)  left bucket borders
    logw = logw_ref[...].astype(jnp.float32)       # (1, K)  log bucket widths
    logits = logits_ref[...].astype(jnp.float32)   # (TM, K) upcast on-chip
    y = y_ref[...].astype(jnp.float32)             # (TM, 1)

    tm, k = logits.shape

    # torch.searchsorted(borders, y, right=False) - 1
    #   == (# borders strictly less than y) - 1.
    # For in-support y the last border (borders[-1]) can never be < y, so the
    # count over the K left borders is identical, and y == borders[-1]
    # automatically lands on bucket K-1 (all K left borders are < y).
    # TODO(synk): PyTorch asserts y is inside [borders[0], borders[-1]];
    # out-of-range y is silently clamped to bucket 0 / K-1 here.
    count = jnp.sum((left < y).astype(jnp.int32), axis=-1, keepdims=True)
    target = count - 1                                          # (TM, 1)
    target = jnp.where(y == left[:, 0:1], 0, target)            # y == borders[0]

    # log-sum-exp over the bar axis (stable)
    m = jnp.max(logits, axis=-1, keepdims=True)
    lse = m + jnp.log(jnp.sum(jnp.exp(logits - m), axis=-1, keepdims=True))

    # gather logits[target] and log_width[target] via lane-select + XLU reduce
    lane_idx = jax.lax.broadcasted_iota(jnp.int32, (tm, k), 1)
    hit = lane_idx == target                                    # (TM, K) bool
    sel_logit = jnp.sum(jnp.where(hit, logits, 0.0), axis=-1, keepdims=True)
    sel_logw = jnp.sum(jnp.where(hit, logw, 0.0), axis=-1, keepdims=True)

    # nll    = -(log_softmax(logits)[target] - log_width[target])
    # smooth = -mean(log_softmax(logits) - log_widths)
    nll = lse - sel_logit + sel_logw                            # (TM, 1)
    mean_logits = jnp.mean(logits, axis=-1, keepdims=True)      # (TM, 1)
    mean_logw = jnp.mean(logw, axis=-1, keepdims=True)          # (1, 1)
    smooth = lse - mean_logits + mean_logw                      # (TM, 1)

    loss = (1.0 - smoothing) * nll + smoothing * smooth
    loss_ref[...] = loss.astype(loss_ref.dtype)


def bar_distribution_loss(logits, y, borders, smoothing=0.0, training=True):
    """Pallas implementation of BarDistribution.forward.

    logits: (..., K) float (any float dtype; kept in native dtype for the DMA)
    y:      (...)    float, expected in [borders[0], borders[-1]]
    borders: (K+1,) sorted float
    Returns: loss of shape (...), float32.
    """
    k = borders.shape[0] - 1
    assert logits.shape[-1] == k
    batch_shape = logits.shape[:-1]
    n = 1
    for d in batch_shape:
        n *= d

    smoothing_eff = float(smoothing) if training else 0.0

    # Keep logits in their native dtype (bf16 in most models) -> half the HBM
    # read bytes; the kernel upcasts to f32 on-chip.
    logits_flat = logits.reshape(n, k)
    y_flat = y.reshape(n, 1).astype(jnp.float32)

    borders_f32 = borders.astype(jnp.float32)
    left_2d = borders_f32[:-1].reshape(1, k)                     # left edges
    logw_2d = jnp.log(borders_f32[1:] - borders_f32[:-1]).reshape(1, k)

    # Row tile: as large as possible (pipeline-overhead amortization, big DMAs)
    # but multiple of 8 and capped so the double-buffered logits tile plus f32
    # temporaries stay comfortably inside the smallest scoped-VMEM default
    # (16 MiB v5e / 32 MiB v6e-v7x). For K=128 this resolves to 512 rows.
    bytes_per_row_f32 = k * 4
    max_rows_by_vmem = max(8, ((4 * 1024 * 1024) // bytes_per_row_f32) // 8 * 8)
    tm = max(8, min(512, max_rows_by_vmem, _round_up(n, 8)))
    n_pad = _round_up(n, tm)
    pad = n_pad - n
    if pad:
        # pad with safe rows (logits = 0, y = left border); sliced off below
        logits_flat = jnp.pad(logits_flat, ((0, pad), (0, 0)))
        y_flat = jnp.concatenate(
            [y_flat,
             jnp.broadcast_to(borders_f32[0], (pad, 1)).astype(jnp.float32)],
            axis=0)

    grid = (n_pad // tm,)
    kernel = functools.partial(_bar_loss_kernel, smoothing=smoothing_eff)

    out = pl.pallas_call(
        kernel,
        out_shape=jax.ShapeDtypeStruct((n_pad, 1), jnp.float32),
        grid_spec=pltpu.PrefetchScalarGridSpec(
            num_scalar_prefetch=0,
            grid=grid,
            in_specs=[
                pl.BlockSpec((1, k), lambda i: (0, 0)),    # left borders (resident)
                pl.BlockSpec((1, k), lambda i: (0, 0)),    # log widths   (resident)
                pl.BlockSpec((tm, k), lambda i: (i, 0)),   # logits row tile
                pl.BlockSpec((tm, 1), lambda i: (i, 0)),   # y row tile
            ],
            out_specs=pl.BlockSpec((tm, 1), lambda i: (i, 0)),
        ),
        compiler_params=pltpu.CompilerParams(
            dimension_semantics=("parallel",)),
    )(left_2d, logw_2d, logits_flat, y_flat)

    return out[:n, 0].reshape(batch_shape)


def _reference_loss(logits, y, borders, smoothing):
    """Pure-JAX reference mirroring the PyTorch forward."""
    widths = borders[1:] - borders[:-1]
    k = widths.shape[0]
    idx = jnp.searchsorted(borders, y, side="left") - 1
    idx = jnp.where(y == borders[0], 0, idx)
    idx = jnp.where(y == borders[-1], k - 1, idx)
    logp = jax.nn.log_softmax(logits.astype(jnp.float32), axis=-1) - jnp.log(widths)
    nll = -jnp.take_along_axis(logp, idx[..., None], axis=-1)[..., 0]
    smooth = -jnp.mean(logp, axis=-1)
    return (1.0 - smoothing) * nll + smoothing * smooth


if __name__ == "__main__":
    key = jax.random.PRNGKey(0)
    k_logits, k_y = jax.random.split(key)

    B, S, K = 2, 8, 128          # num_bars = 128 -> 129 borders
    smoothing = 0.1              # module is in training mode by default

    # deterministic "parameters": sorted borders buffer
    borders = jnp.linspace(-3.0, 3.0, K + 1, dtype=jnp.float32)

    logits = jax.random.normal(k_logits, (B, S, K), dtype=jnp.float32)
    y = jax.random.uniform(
        k_y, (B, S), dtype=jnp.float32,
        minval=float(borders[0]) + 1e-3, maxval=float(borders[-1]) - 1e-3)
    # exercise the edge-case corrections of map_to_bucket_idx
    y = y.at[0, 0].set(borders[0])
    y = y.at[0, 1].set(borders[-1])

    loss = bar_distribution_loss(logits, y, borders,
                                 smoothing=smoothing, training=True)
    loss = jax.block_until_ready(loss)

    ref = _reference_loss(logits, y, borders, smoothing)
    assert loss.shape == (B, S)
    assert jnp.allclose(loss, ref, rtol=1e-5, atol=1e-5), (loss, ref)

    print("KERNEL_OK")
</pallas_src>

<mosaic_0001>
module attributes {stable_mosaic.version = 11 : i64} {
  func.func @_bar_loss_kernel(%arg0: i32, %arg1: memref<1x128xf32, #tpu.memory_space<vmem>>, %arg2: memref<1x128xf32, #tpu.memory_space<vmem>>, %arg3: memref<16x128xf32, #tpu.memory_space<vmem>>, %arg4: memref<16x1xf32, #tpu.memory_space<vmem>>, %arg5: memref<16x1xf32, #tpu.memory_space<vmem>>) attributes {dimension_semantics = [#tpu.dimension_semantics<parallel>], iteration_bounds = array<i64: 1>, scalar_prefetch = 0 : i64, scratch_operands = 0 : i64, tpu.core_type = #tpu.core_type<tc>, window_params = [{pipeline_mode = #tpu.pipeline_mode<synchronous>, transform_indices = @transform_0, window_bounds = array<i64: 1, 128>}, {pipeline_mode = #tpu.pipeline_mode<synchronous>, transform_indices = @transform_1, window_bounds = array<i64: 1, 128>}, {transform_indices = @transform_2, window_bounds = array<i64: 16, 128>}, {transform_indices = @transform_3, window_bounds = array<i64: 16, 1>}, {transform_indices = @transform_4, window_bounds = array<i64: 16, 1>}]} {
    %c0 = arith.constant 0 : index
    %c0_0 = arith.constant 0 : index
    %0 = vector.load %arg1[%c0, %c0_0] : memref<1x128xf32, #tpu.memory_space<vmem>>, vector<1x128xf32>
    %c0_1 = arith.constant 0 : index
    %c0_2 = arith.constant 0 : index
    %1 = vector.load %arg2[%c0_1, %c0_2] : memref<1x128xf32, #tpu.memory_space<vmem>>, vector<1x128xf32>
    %c0_3 = arith.constant 0 : index
    %c0_4 = arith.constant 0 : index
    %2 = vector.load %arg3[%c0_3, %c0_4] : memref<16x128xf32, #tpu.memory_space<vmem>>, vector<16x128xf32>
    %c0_5 = arith.constant 0 : index
    %c0_6 = arith.constant 0 : index
    %3 = vector.load %arg4[%c0_5, %c0_6] : memref<16x1xf32, #tpu.memory_space<vmem>>, vector<16x1xf32>
    %4 = vector.broadcast %0 : vector<1x128xf32> to vector<16x128xf32>
    %5 = vector.broadcast %3 : vector<16x1xf32> to vector<16x128xf32>
    %6 = arith.cmpf olt, %4, %5 : vector<16x128xf32>
    %7 = arith.extui %6 : vector<16x128xi1> to vector<16x128xi32>
    %cst = arith.constant dense<0> : vector<16xi32>
    %8 = vector.multi_reduction <add>, %7, %cst [1] : vector<16x128xi32> to vector<16xi32>
    %9 = vector.shape_cast %8 : vector<16xi32> to vector<16x1xi32>
    %c1_i32 = arith.constant 1 : i32
    %10 = vector.broadcast %c1_i32 : i32 to vector<16x1xi32>
    %11 = arith.subi %9, %10 : vector<16x1xi32>
    %12 = vector.extract_strided_slice %0 {offsets = [0, 0], sizes = [1, 1], strides = [1, 1]} : vector<1x128xf32> to vector<1x1xf32>
    %13 = vector.broadcast %12 : vector<1x1xf32> to vector<16x1xf32>
    %14 = arith.cmpf oeq, %3, %13 : vector<16x1xf32>
    %c0_i32 = arith.constant 0 : i32
    %15 = vector.broadcast %c0_i32 : i32 to vector<16x1xi32>
    %16 = arith.select %14, %15, %11 : vector<16x1xi1>, vector<16x1xi32>
    %cst_7 = arith.constant dense<0xFF800000> : vector<16xf32>
    %17 = vector.multi_reduction <maximumf>, %2, %cst_7 [1] : vector<16x128xf32> to vector<16xf32>
    %18 = vector.shape_cast %17 : vector<16xf32> to vector<16x1xf32>
    %19 = vector.broadcast %18 : vector<16x1xf32> to vector<16x128xf32>
    %20 = arith.subf %2, %19 : vector<16x128xf32>
    %21 = math.exp %20 : vector<16x128xf32>
    %cst_8 = arith.constant dense<0.000000e+00> : vector<16xf32>
    %22 = vector.multi_reduction <add>, %21, %cst_8 [1] : vector<16x128xf32> to vector<16xf32>
    %23 = vector.shape_cast %22 : vector<16xf32> to vector<16x1xf32>
    %24 = math.log %23 : vector<16x1xf32>
    %25 = arith.addf %18, %24 : vector<16x1xf32>
    %26 = tpu.iota {dimensions = array<i32: 1>} : vector<16x128xi32>
    %27 = vector.broadcast %16 : vector<16x1xi32> to vector<16x128xi32>
    %28 = arith.cmpi eq, %26, %27 : vector<16x128xi32>
    %cst_9 = arith.constant 0.000000e+00 : f32
    %29 = vector.broadcast %cst_9 : f32 to vector<16x128xf32>
    %30 = arith.select %28, %2, %29 : vector<16x128xi1>, vector<16x128xf32>
    %cst_10 = arith.constant dense<0.000000e+00> : vector<16xf32>
    %31 = vector.multi_reduction <add>, %30, %cst_10 [1] : vector<16x128xf32> to vector<16xf32>
    %32 = vector.shape_cast %31 : vector<16xf32> to vector<16x1xf32>
    %cst_11 = arith.constant 0.000000e+00 : f32
    %33 = vector.shape_cast %1 : vector<1x128xf32> to vector<1x128xf32>
    %34 = vector.broadcast %33 : vector<1x128xf32> to vector<16x128xf32>
    %35 = vector.broadcast %cst_11 : f32 to vector<16x128xf32>
    %36 = arith.select %28, %34, %35 : vector<16x128xi1>, vector<16x128xf32>
    %cst_12 = arith.constant dense<0.000000e+00> : vector<16xf32>
    %37 = vector.multi_reduction <add>, %36, %cst_12 [1] : vector<16x128xf32> to vector<16xf32>
    %38 = vector.shape_cast %37 : vector<16xf32> to vector<16x1xf32>
    %39 = arith.subf %25, %32 : vector<16x1xf32>
    %40 = arith.addf %39, %38 : vector<16x1xf32>
    %cst_13 = arith.constant dense<0.000000e+00> : vector<16xf32>
    %41 = vector.multi_reduction <add>, %2, %cst_13 [1] : vector<16x128xf32> to vector<16xf32>
    %42 = vector.shape_cast %41 : vector<16xf32> to vector<16x1xf32>
    %cst_14 = arith.constant 1.280000e+02 : f32
    %43 = vector.broadcast %cst_14 : f32 to vector<16x1xf32>
    %44 = arith.divf %42, %43 : vector<16x1xf32>
    %cst_15 = arith.constant dense<0.000000e+00> : vector<1xf32>
    %45 = vector.multi_reduction <add>, %1, %cst_15 [1] : vector<1x128xf32> to vector<1xf32>
    %46 = vector.shape_cast %45 : vector<1xf32> to vector<1x1xf32>
    %cst_16 = arith.constant 1.280000e+02 : f32
    %47 = vector.broadcast %cst_16 : f32 to vector<1x1xf32>
    %48 = arith.divf %46, %47 : vector<1x1xf32>
    %49 = arith.subf %25, %44 : vector<16x1xf32>
    %50 = vector.broadcast %48 : vector<1x1xf32> to vector<16x1xf32>
    %51 = arith.addf %49, %50 : vector<16x1xf32>
    %cst_17 = arith.constant 0.899999976 : f32
    %52 = vector.broadcast %cst_17 : f32 to vector<16x1xf32>
    %53 = arith.mulf %52, %40 : vector<16x1xf32>
    %cst_18 = arith.constant 1.000000e-01 : f32
    %54 = vector.broadcast %cst_18 : f32 to vector<16x1xf32>
    %55 = arith.mulf %54, %51 : vector<16x1xf32>
    %56 = arith.addf %53, %55 : vector<16x1xf32>
    %c0_19 = arith.constant 0 : index
    %c0_20 = arith.constant 0 : index
    %57 = vector.load %arg5[%c0_19, %c0_20] : memref<16x1xf32, #tpu.memory_space<vmem>>, vector<16x1xf32>
    tpu.vector_store %arg5[%c0_19, %c0_20], %56 {strides = array<i32>} : memref<16x1xf32, #tpu.memory_space<vmem>>, vector<16x1xf32>,
    return
  }
  func.func @transform_0(%arg0: i32) -> (i32, i32) {
    %c0_i32 = arith.constant 0 : i32
    %c0_i32_0 = arith.constant 0 : i32
    %c0_i32_1 = arith.constant 0 : i32
    return %c0_i32, %c0_i32_0 : i32, i32
  }
  func.func @transform_1(%arg0: i32) -> (i32, i32) {
    %c0_i32 = arith.constant 0 : i32
    %c0_i32_0 = arith.constant 0 : i32
    %c0_i32_1 = arith.constant 0 : i32
    return %c0_i32, %c0_i32_0 : i32, i32
  }
  func.func @transform_2(%arg0: i32) -> (i32, i32) {
    %c0_i32 = arith.constant 0 : i32
    %c0_i32_0 = arith.constant 0 : i32
    return %arg0, %c0_i32 : i32, i32
  }
  func.func @transform_3(%arg0: i32) -> (i32, i32) {
    %c0_i32 = arith.constant 0 : i32
    %c0_i32_0 = arith.constant 0 : i32
    return %arg0, %c0_i32 : i32, i32
  }
  func.func @transform_4(%arg0: i32) -> (i32, i32) {
    %c0_i32 = arith.constant 0 : i32
    %c0_i32_0 = arith.constant 0 : i32
    return %arg0, %c0_i32 : i32, i32
  }
}

</mosaic_0001>

<bundles_post_ra>
// kernel: tpu_custom_call.1
= control target key start
LH: loop header
LB: loop body
LE: loop exit
PB: predicated region body
PF: predicated region fallthrough
CT: control target
= control target key end

     0   :  { %9 = vsyncpa [#allocation3], 0  ;;  %s216_s18 = smov [#allocation2]   ;;  %s282_s0 = inlined_call_operand.vmem [shape: f32[1,128], index: 0, kind: input, shape index: {}]   ;;  %s283_s1 = inlined_call_operand.hbm [shape: f32[1,128], index: 1, kind: input, shape index: {}]   ;;  %s284_s2 = inlined_call_operand.vmem [shape: f32[16,128], index: 2, kind: input, shape index: {}]   ;;  %s285_s3 = inlined_call_operand.vmem [shape: f32[16,1], index: 3, kind: input, shape index: {}]   ;;  %s286_s4 = inlined_call_operand.vmem [shape: f32[16,1], index: 4, kind: output, shape index: {}]  }
   0x1   :  { %s17_s17 = sshll.u32 %s283_s1, 4  ;;  %s19_s19 = sshll.u32 %s216_s18, 4  ;;  %s18_s17 = int_to_ptr.hbm [resolvable:$true] %s17_s17  ;;  %s20_s19 = int_to_ptr.vmem [resolvable:$true] %s19_s19 }
   0x2   :  { %22 = dma.hbm_to_vmem [thread:$0]  %s18_s17, 16, %s20_s19, [#allocation3]  }
   0x3   :  { %214 = dma.done.wait [#allocation3], 16  }
   0x4   :  { %215 = vsyncadd [#allocation3], 4294967280  ;;  %v217_v0 = vmov 0   ;;  %v35_v1 = vld [vmem:[%s285_s3] sm:$0xff]  ;;  %v36_v2 = vld [vmem:[%s285_s3 + $0x8] sm:$0xff]  ;;  %vm146_vm4 = vcmask 1040384   ;;  %v104_v44 = vlaneseq }
   0x5   :  { %175 = vset.pattern.permute.xlu0 %v217_v0  ;;  %176 = vset.pattern.permute.xlu2 %v217_v0  ;;  %v256_v3 = vld [vmem:[%s284_s2] sm:$0xff]  ;;  %v266_v5 = vld [vmem:[%s284_s2 + $0x8] sm:$0xff]  ;;  %v218_v53 = vmov 128.0   ;;  %vm162_vm8 = vcmask 7168  }
   0x6   :  { %177 = vset.pattern.permute.xlu1 %v217_v0  ;;  %42 = vperm.xlu0 %175, %v35_v1   ;;  %v178_v4 = vld [vmem:[%s282_s0] ss:$0 sm:$0xff]  ;;  %v105_v45 = vand.u32 127, %v104_v44 }
   0x7   :  { %vm80_vm2 = vcmp.eq.f32.partialorder %v35_v1, %v178_v4  ;;  %vm81_vm3 = vcmp.eq.f32.partialorder %v36_v2, %v178_v4  ;;  %v32_v34 = vld [vmem:[#allocation2] sm:$0x1] }
   0x8   :  { %v147_v35 = vsel %vm146_vm4, %v32_v34, 0.0  ;;  %v179_v48 = vld [vmem:[#allocation2] ss:$0 sm:$0xff] }
   0xe   :  { %47 = vperm.xlu0 %175, %v36_v2  }
  0x38   :  { %84 = vmax.xlane.f32.xlu0 %v256_v3 }
  0x40   :  { %133 = vadd.xlane.f32.xlu0 %v256_v3 }
  0x48   :  { %135 = vadd.xlane.f32.xlu0 %v266_v5 }
  0x50   :  { %148 = vadd.xlane.f32.xlu0 %v147_v35 }
  0x78   :  { %v43_v6 = vpop.permute.xlu0 %42 }
  0x79   :  { %vm50_vm0 = vcmp.lt.f32.partialorder %v178_v4, %v43_v6 }
  0x7a   :  { %v52_v7 = vsel %vm50_vm0, 1, %v217_v0 }
  0x7b   :  { %v55_v8 = vshrl.u32 %v52_v7, 16  ;;  %v54_v9 = vand.u32 65535, %v52_v7 }
  0x7d   :  { %v57_v10 = vcvt.s32.f32 %v55_v8  ;;  %v56_v11 = vcvt.s32.f32 %v54_v9 }
  0x7f   :  { %60 = vadd.xlane.f32.xlu1 %v57_v10  ;;  %58 = vadd.xlane.f32.xlu2 %v56_v11 }
  0x80   :  { %v48_v12 = vpop.permute.xlu0 %47 }
  0x81   :  { %vm51_vm1 = vcmp.lt.f32.partialorder %v178_v4, %v48_v12 }
  0x82   :  { %v53_v13 = vsel %vm51_vm1, 1, %v217_v0 }
  0x83   :  { %v67_v14 = vshrl.u32 %v53_v13, 16  ;;  %v66_v15 = vand.u32 65535, %v53_v13 }
  0x85   :  { %v69_v16 = vcvt.s32.f32 %v67_v14  ;;  %v68_v17 = vcvt.s32.f32 %v66_v15 }
  0x87   :  { %72 = vadd.xlane.f32.xlu1 %v69_v16  ;;  %70 = vadd.xlane.f32.xlu2 %v68_v17 }
  0x8f   :  { %86 = vmax.xlane.f32.xlu1 %v266_v5 }
  0xab   :  { %v85_v36 = vpop.xlane.xlu0 %84 }
  0xac   :  { %v88_v37 = vsub.f32 %v256_v3, %v85_v36 }
  0xae   :  { %v90_v38 = vmul.f32 1.442695, %v88_v37 }
  0xb0   :  { %180 = vpow2.f32 %v90_v38 }
  0xb3   :  { %v134_v54 = vpop.xlane.xlu0 %133 }
  0xb6   :  { %v181_v42 = vpop.eup %180 }
  0xbb   :  { %v136_v59 = vpop.xlane.xlu0 %135 }
  0xc3   :  { %v149_v1 = vpop.xlane.xlu0 %148 }
  0xf2   :  { %v61_v18 = vpop.xlane.xlu1 %60  ;;  %v59_v19 = vpop.xlane.xlu2 %58 }
  0xf3   :  { %v63_v20 = vcvt.f32.s32 %v61_v18  ;;  %v62_v22 = vcvt.f32.s32 %v59_v19 }
  0xf5   :  { %v64_v21 = vshll.u32 %v63_v20, 16 }
  0xf7   :  { %v65_v23 = vadd.s32 %v64_v21, %v62_v22 }
  0xf9   :  { %v170_v24 = vadd.s32 4294967295, %v65_v23 }
  0xfa   :  { %v73_v25 = vpop.xlane.xlu1 %72  ;;  %v71_v26 = vpop.xlane.xlu2 %70 }
  0xfb   :  { %v75_v27 = vcvt.f32.s32 %v73_v25  ;;  %v82_v28 = vsel %vm80_vm2, 0, %v170_v24  ;;  %v74_v30 = vcvt.f32.s32 %v71_v26 }
  0xfc   :  { %107 = vperm.xlu2 %176, %v82_v28  }
  0xfd   :  { %v76_v29 = vshll.u32 %v75_v27, 16 }
  0xff   :  { %v77_v31 = vadd.s32 %v76_v29, %v74_v30 }
 0x101   :  { %v171_v32 = vadd.s32 4294967295, %v77_v31 }
 0x102   :  { %v87_v39 = vpop.xlane.xlu1 %86 }
 0x103   :  { %v83_v33 = vsel %vm81_vm3, 0, %v171_v32  ;;  %v89_v40 = vsub.f32 %v266_v5, %v87_v39 }
 0x104   :  { %110 = vperm.xlu1 %177, %v83_v33  }
 0x105   :  { %v92_v41 = vmul.f32 1.442695, %v89_v40 }
 0x107   :  { %182 = vpow2.f32 %v92_v41 }
 0x108   :  { %184 = vrcp.f32 %v218_v53 }
 0x10d   :  { %v183_v43 = vpop.eup %182 }
 0x10e   :  { %v185_v55 = vpop.eup %184 }
 0x10f   :  { %v138_v56 = vmul.f32 128.0, %v185_v55  ;;  %vm142_vm7 = vweird.f32 %v185_v55 }
 0x111   :  { %v139_v58 = vsub.f32 1.0, %v138_v56 }
 0x113   :  { %v140_v60 = vmul.f32 %v185_v55, %v139_v58 }
 0x115   :  { %v141_v62 = vadd.f32 %v185_v55, %v140_v60 }
 0x117   :  { %v143_v0 = vsel %vm142_vm7, %v185_v55, %v141_v62 }
 0x118   :  { %v144_v2 = vmul.f32 %v143_v0, %v134_v54  ;;  %v145_v18 = vmul.f32 %v143_v0, %v136_v59 }
 0x125   :  { %94 = vadd.xlane.f32.xlu2 %v181_v42 }
 0x12e   :  { %96 = vadd.xlane.f32.xlu1 %v183_v43 }
 0x156   :  { %v108_v46 = vpop.permute.xlu2 %107 }
 0x157   :  { %vm112_vm5 = vcmp.eq.s32.totalorder %v105_v45, %v108_v46 }
 0x158   :  { %v114_v47 = vsel %vm112_vm5, %v256_v3, 0.0  ;;  %v123_v49 = vsel %vm112_vm5, %v179_v48, 0.0  ;;  %v150_v3 = vmul.f32 %v149_v1, %v143_v0 }
 0x159   :  { %116 = vadd.xlane.f32.xlu2 %v114_v47 }
 0x15a   :  { %v153_v6 = vperm.slane %v150_v3, 0 }
 0x161   :  { %125 = vadd.xlane.f32.xlu2 %v123_v49 }
 0x176   :  { %v111_v50 = vpop.permute.xlu1 %110 }
 0x177   :  { %vm113_vm6 = vcmp.eq.s32.totalorder %v105_v45, %v111_v50 }
 0x178   :  { %v115_v51 = vsel %vm113_vm6, %v266_v5, 0.0  ;;  %v124_v52 = vsel %vm113_vm6, %v179_v48, 0.0 }
 0x179   :  { %118 = vadd.xlane.f32.xlu0 %v115_v51 }
 0x181   :  { %127 = vadd.xlane.f32.xlu0 %v124_v52 }
 0x198   :  { %v95_v57 = vpop.xlane.xlu2 %94 }
 0x199   :  { %186 = vlog2.f32 %v95_v57 }
 0x19f   :  { %v187_v61 = vpop.eup %186 }
 0x1a0   :  { %v99_v63 = vmul.f32 0.6931472, %v187_v61 }
 0x1a1   :  { %v97_v15 = vpop.xlane.xlu1 %96 }
 0x1a2   :  { %v102_v4 = vadd.f32 %v99_v63, %v85_v36  ;;  %188 = vlog2.f32 %v97_v15 }
 0x1a4   :  { %v151_v7 = vsub.f32 %v102_v4, %v144_v2 }
 0x1a6   :  { %v154_v9 = vadd.f32 %v153_v6, %v151_v7 }
 0x1a8   :  { %v158_v12 = vmul.f32 0.1, %v154_v9  ;;  %v189_v16 = vpop.eup %188 }
 0x1a9   :  { %v101_v17 = vmul.f32 0.6931472, %v189_v16 }
 0x1ab   :  { %v103_v19 = vadd.f32 %v101_v17, %v87_v39 }
 0x1ad   :  { %v152_v21 = vsub.f32 %v103_v19, %v145_v18 }
 0x1af   :  { %v155_v23 = vadd.f32 %v153_v6, %v152_v21 }
 0x1b1   :  { %v159_v27 = vmul.f32 0.1, %v155_v23 }
 0x1cc   :  { %v117_v5 = vpop.xlane.xlu2 %116 }
 0x1cd   :  { %v129_v8 = vsub.f32 %v102_v4, %v117_v5 }
 0x1d4   :  { %v126_v10 = vpop.xlane.xlu2 %125 }
 0x1d5   :  { %v131_v11 = vadd.f32 %v129_v8, %v126_v10 }
 0x1d7   :  { %v156_v13 = vmul.f32 0.9, %v131_v11 }
 0x1d9   :  { %v160_v14 = vadd.f32 %v158_v12, %v156_v13 }
 0x1db   :  { %163 = vst.msk [vmem:[%s286_s4] sm:$0xff] %vm162_vm8, %v160_v14 }
 0x1ec   :  { %v119_v20 = vpop.xlane.xlu0 %118 }
 0x1ed   :  { %v130_v22 = vsub.f32 %v103_v19, %v119_v20 }
 0x1f4   :  { %v128_v24 = vpop.xlane.xlu0 %127 }
 0x1f5   :  { %v132_v25 = vadd.f32 %v130_v22, %v128_v24 }
 0x1f7   :  { %v157_v26 = vmul.f32 0.9, %v132_v25 }
 0x1f9   :  { %v161_v28 = vadd.f32 %v159_v27, %v157_v26 }
 0x1fb   :  { %164 = vst.msk [vmem:[%s286_s4 + $0x8] sm:$0xff] %vm162_vm8, %v161_v28 }
 0x1fc   :  { %169 = vsyncpa [#allocation3], 1 }

</bundles_post_ra>
